<compile_context>
chip_gen: v7x
topology: tpu7x:2x2x1
jax: 0.10.0
libtpu: 0.0.40
codegen_flags: <defaults>
</compile_context>

<pallas_src>
import jax
import jax.numpy as jnp
from jax.experimental import pallas as pl
from jax.experimental.pallas import tpu as pltpu


def _round_up(x: int, m: int) -> int:
    return (x + m - 1) // m * m


def cosine_linear_kernel(x_ref, w_ref, winv_ref, o_ref):
    """One (tm, tn) output tile of sigma * cos_sim(x, W)."""
    x = x_ref[...]          # (tm, D)  f32
    w = w_ref[...]          # (tn, D)  f32 (un-normalized weight rows)
    winv = winv_ref[...]    # (1, tn)  f32 == sigma / max(||w_j||_2, eps)

    # Per-row inverse L2 norm of x:
    #   rsqrt(max(sum(x^2), eps^2)) == 1 / max(||x||_2, eps)   (F.normalize eps)
    x_inv = jax.lax.rsqrt(
        jnp.maximum(jnp.sum(x * x, axis=-1, keepdims=True), jnp.float32(1e-24))
    )                       # (tm, 1)

    # Contract the last (D) axis of both operands directly on the MXU;
    # no explicit transpose of the weight tile is materialized.
    acc = jax.lax.dot_general(
        x, w,
        dimension_numbers=(((1,), (1,)), ((), ())),
        preferred_element_type=jnp.float32,
    )                       # (tm, tn)

    # Fused epilogue: normalize rows/cols and apply sigma (already in winv).
    o_ref[...] = (acc * x_inv * winv).astype(o_ref.dtype)


def cosine_linear(x, weight, sigma=None, *, eps=1e-12):
    """x: (B, D), weight: (O, D), sigma: scalar / (1,) / None  ->  (B, O) f32."""
    x = jnp.asarray(x, jnp.float32)
    weight = jnp.asarray(weight, jnp.float32)
    B, D = x.shape
    O, D2 = weight.shape
    assert D == D2, "in_features mismatch"

    # ---- hoisted precompute: sigma * 1/||w_row|| as a (1, O) vector ----
    w_sumsq = jnp.sum(weight * weight, axis=1)
    w_inv = jax.lax.rsqrt(jnp.maximum(w_sumsq, jnp.float32(eps * eps)))
    if sigma is not None:
        w_inv = w_inv * jnp.asarray(sigma, jnp.float32).reshape(())
    w_inv = w_inv.reshape(1, O)

    # ---- tiling (lane-dense, MXU-aligned, VMEM-budgeted) ----
    D_pad = _round_up(D, 128)
    tm = 256 if B >= 256 else _round_up(B, 8)
    tn = 512 if O >= 512 else _round_up(O, 128)

    def footprint(tm_, tn_):
        # double-buffered x / w / w_inv input blocks + double-buffered out block
        return 4 * (2 * (tm_ * D_pad + tn_ * D_pad + tn_) + 2 * tm_ * tn_)

    vmem_budget = 36 * 1024 * 1024      # conservative: fits v7x (64 MiB physical)
    while footprint(tm, tn) > vmem_budget and tn > 128:
        tn = max(128, _round_up(tn // 2, 128))
    while footprint(tm, tn) > vmem_budget and tm > 8:
        tm = max(8, _round_up(tm // 2, 8))

    B_pad = _round_up(B, tm)
    O_pad = _round_up(O, tn)

    x_p = jnp.pad(x, ((0, B_pad - B), (0, D_pad - D)))
    w_p = jnp.pad(weight, ((0, O_pad - O), (0, D_pad - D)))
    winv_p = jnp.pad(w_inv, ((0, 0), (0, O_pad - O)))

    grid = (B_pad // tm, O_pad // tn)

    out = pl.pallas_call(
        cosine_linear_kernel,
        out_shape=jax.ShapeDtypeStruct((B_pad, O_pad), jnp.float32),
        grid_spec=pltpu.PrefetchScalarGridSpec(
            num_scalar_prefetch=0,
            grid=grid,
            in_specs=[
                pl.BlockSpec((tm, D_pad), lambda i, j: (i, 0)),   # x tile
                pl.BlockSpec((tn, D_pad), lambda i, j: (j, 0)),   # W tile
                pl.BlockSpec((1, tn), lambda i, j: (0, j)),       # sigma/||w||
            ],
            out_specs=pl.BlockSpec((tm, tn), lambda i, j: (i, j)),
        ),
        compiler_params=pltpu.CompilerParams(
            dimension_semantics=("parallel", "parallel"),
            vmem_limit_bytes=48 * 1024 * 1024,
        ),
    )(x_p, w_p, winv_p)

    return out[:B, :O]


if __name__ == "__main__":
    key = jax.random.PRNGKey(0)
    k_x, k_w, k_x2, k_w2 = jax.random.split(key, 4)

    def ref(x, w, s):
        xn = x / jnp.maximum(jnp.linalg.norm(x, axis=1, keepdims=True), 1e-12)
        wn = w / jnp.maximum(jnp.linalg.norm(w, axis=1, keepdims=True), 1e-12)
        o = jnp.matmul(xn, wn.T, precision=jax.lax.Precision.HIGHEST)
        return o if s is None else s * o

    # ---- small demo shapes consistent with the module ----
    B, in_features, out_features = 8, 32, 16
    x = jax.random.normal(k_x, (B, in_features), dtype=jnp.float32)
    stdv = 1.0 / (in_features ** 0.5)          # reset_parameters()
    weight = jax.random.uniform(
        k_w, (out_features, in_features), dtype=jnp.float32,
        minval=-stdv, maxval=stdv)
    sigma = jnp.ones((1,), dtype=jnp.float32)  # sigma init = 1

    out = cosine_linear(x, weight, sigma)
    jax.block_until_ready(out)
    assert out.shape == (B, out_features)
    assert jnp.allclose(out, ref(x, weight, sigma), atol=1e-5, rtol=1e-5)

    # ---- second check: exercises a multi-tile (2 x 2) grid with padding ----
    B2, D2, O2 = 272, 96, 640
    x2 = jax.random.normal(k_x2, (B2, D2), dtype=jnp.float32)
    stdv2 = 1.0 / (D2 ** 0.5)
    w2 = jax.random.uniform(k_w2, (O2, D2), dtype=jnp.float32,
                            minval=-stdv2, maxval=stdv2)
    sigma2 = jnp.full((1,), 1.5, dtype=jnp.float32)
    out2 = cosine_linear(x2, w2, sigma2)
    jax.block_until_ready(out2)
    assert out2.shape == (B2, O2)
    assert jnp.allclose(out2, ref(x2, w2, sigma2), atol=2e-5, rtol=2e-5)

    print("KERNEL_OK")
</pallas_src>

<mosaic_0001>
module attributes {stable_mosaic.version = 11 : i64} {
  func.func @cosine_linear_kernel(%arg0: i32, %arg1: i32, %arg2: memref<8x128xf32, #tpu.memory_space<vmem>>, %arg3: memref<128x128xf32, #tpu.memory_space<vmem>>, %arg4: memref<1x128xf32, #tpu.memory_space<vmem>>, %arg5: memref<8x128xf32, #tpu.memory_space<vmem>>) attributes {dimension_semantics = [#tpu.dimension_semantics<parallel>, #tpu.dimension_semantics<parallel>], iteration_bounds = array<i64: 1, 1>, scalar_prefetch = 0 : i64, scratch_operands = 0 : i64, tpu.core_type = #tpu.core_type<tc>, window_params = [{transform_indices = @transform_0, window_bounds = array<i64: 8, 128>}, {transform_indices = @transform_1, window_bounds = array<i64: 128, 128>}, {transform_indices = @transform_2, window_bounds = array<i64: 1, 128>}, {transform_indices = @transform_3, window_bounds = array<i64: 8, 128>}]} {
    %c0 = arith.constant 0 : index
    %c0_0 = arith.constant 0 : index
    %0 = vector.load %arg2[%c0, %c0_0] : memref<8x128xf32, #tpu.memory_space<vmem>>, vector<8x128xf32>
    %c0_1 = arith.constant 0 : index
    %c0_2 = arith.constant 0 : index
    %1 = vector.load %arg3[%c0_1, %c0_2] : memref<128x128xf32, #tpu.memory_space<vmem>>, vector<128x128xf32>
    %c0_3 = arith.constant 0 : index
    %c0_4 = arith.constant 0 : index
    %2 = vector.load %arg4[%c0_3, %c0_4] : memref<1x128xf32, #tpu.memory_space<vmem>>, vector<1x128xf32>
    %3 = arith.mulf %0, %0 : vector<8x128xf32>
    %cst = arith.constant dense<0.000000e+00> : vector<8xf32>
    %4 = vector.multi_reduction <add>, %3, %cst [1] : vector<8x128xf32> to vector<8xf32>
    %5 = vector.shape_cast %4 : vector<8xf32> to vector<8x1xf32>
    %cst_5 = arith.constant 1.000000e-24 : f32
    %6 = vector.broadcast %cst_5 : f32 to vector<8x1xf32>
    %7 = arith.maximumf %5, %6 : vector<8x1xf32>
    %8 = math.rsqrt %7 : vector<8x1xf32>
    %cst_6 = arith.constant dense<0.000000e+00> : vector<8x128xf32>
    %9 = tpu.matmul %0, %1, %cst_6 {dimension_numbers = #tpu.dot_dimension_numbers<[1], [1], [0], [0], [0, 0, 1, 0], [], []>} : vector<8x128xf32>, vector<128x128xf32>, vector<8x128xf32> -> vector<8x128xf32>
    %10 = vector.broadcast %8 : vector<8x1xf32> to vector<8x128xf32>
    %11 = arith.mulf %9, %10 : vector<8x128xf32>
    %12 = vector.broadcast %2 : vector<1x128xf32> to vector<8x128xf32>
    %13 = arith.mulf %11, %12 : vector<8x128xf32>
    %c0_7 = arith.constant 0 : index
    %c0_8 = arith.constant 0 : index
    %14 = vector.load %arg5[%c0_7, %c0_8] : memref<8x128xf32, #tpu.memory_space<vmem>>, vector<8x128xf32>
    tpu.vector_store %arg5[%c0_7, %c0_8], %13 {strides = array<i32>} : memref<8x128xf32, #tpu.memory_space<vmem>>, vector<8x128xf32>,
    return
  }
  func.func @transform_0(%arg0: i32, %arg1: i32) -> (i32, i32) {
    %c0_i32 = arith.constant 0 : i32
    %c0_i32_0 = arith.constant 0 : i32
    return %arg0, %c0_i32 : i32, i32
  }
  func.func @transform_1(%arg0: i32, %arg1: i32) -> (i32, i32) {
    %c0_i32 = arith.constant 0 : i32
    %c0_i32_0 = arith.constant 0 : i32
    return %arg1, %c0_i32 : i32, i32
  }
  func.func @transform_2(%arg0: i32, %arg1: i32) -> (i32, i32) {
    %c0_i32 = arith.constant 0 : i32
    %c0_i32_0 = arith.constant 0 : i32
    return %c0_i32, %arg1 : i32, i32
  }
  func.func @transform_3(%arg0: i32, %arg1: i32) -> (i32, i32) {
    %c0_i32 = arith.constant 0 : i32
    return %arg0, %arg1 : i32, i32
  }
}

</mosaic_0001>

<bundles_post_ra>
// kernel: tpu_custom_call.1
= control target key start
LH: loop header
LB: loop body
LE: loop exit
PB: predicated region body
PF: predicated region fallthrough
CT: control target
= control target key end

     0   :  { %8 = vsyncpa [#allocation3], 0  ;;  %s392_s0 = inlined_call_operand.hbm [shape: f32[8,128], index: 0, kind: input, shape index: {}]   ;;  %s393_s1 = inlined_call_operand.hbm [shape: f32[128,128], index: 1, kind: input, shape index: {}]   ;;  %s394_s2 = inlined_call_operand.vmem [shape: f32[1,128], index: 2, kind: input, shape index: {}]   ;;  %s395_s3 = inlined_call_operand.hbm [shape: f32[8,128], index: 3, kind: output, shape index: {}]  }
   0x1   :  { %9 = vsyncpa [#allocation6], 0 }
   0x2   :  { %10 = vsyncpa [#allocation4], 0  ;;  %s318_s12 = smov [#allocation2]   ;;  %s319_s14 = smov [#allocation5]  }
   0x3   :  { %s17_s13 = sshll.u32 %s318_s12, 4  ;;  %s26_s15 = sshll.u32 %s319_s14, 4  ;;  %s18_s13 = int_to_ptr.vmem [resolvable:$true] %s17_s13  ;;  %s346_s15 = int_to_ptr.vmem [resolvable:$true] %s26_s15 }
   0x4   :  { %s246_s18 = scalar_lea.hbm %s392_s0, 128 }
   0x5   :  { %p247_p0 = scmp.ne.s32.totalorder %s392_s0, %s246_s18  ;;  %p250_p1 = scmp.lt.u32.totalorder %s246_s18, %s392_s0 }
   0x7   :  { %p252_p2 = pnand %p250_p1, %p247_p0 }
   0x9   :  { %255 = shalt.err (!%p252_p2)
}
   0xa   :  { %s256_s23 = scalar_lea.vmem %s18_s13, 128  ;;  %p261_p4 = scmp.lt.s32.totalorder %s18_s13, %s18_s13 }
   0xb   :  { %p257_p3 = scmp.ne.s32.totalorder %s18_s13, %s256_s23  ;;  %p262_p5 = scmp.lt.s32.totalorder %s256_s23, %s256_s23 }
   0xd   :  { %p263_p6 = por %p262_p5, %p261_p4 }
   0xf   :  { %p264_p7 = pnand %p263_p6, %p257_p3 }
  0x11   :  { %267 = shalt.err (!%p264_p7)
}
  0x12   :  { %20 = dma.hbm_to_vmem [thread:$0]  %s392_s0, 128, %s18_s13, [#allocation3]  }
  0x13   :  { %s268_s28 = scalar_lea.hbm %s393_s1, 2048 }
  0x14   :  { %p269_p8 = scmp.ne.s32.totalorder %s393_s1, %s268_s28  ;;  %p272_p9 = scmp.lt.u32.totalorder %s268_s28, %s393_s1 }
  0x16   :  { %p274_p10 = pnand %p272_p9, %p269_p8 }
  0x18   :  { %277 = shalt.err (!%p274_p10)
}
  0x19   :  { %s278_s6 = scalar_lea.vmem %s346_s15, 2048  ;;  %p283_p12 = scmp.lt.s32.totalorder %s346_s15, %s346_s15 }
  0x1a   :  { %p279_p11 = scmp.ne.s32.totalorder %s346_s15, %s278_s6  ;;  %p284_p13 = scmp.lt.s32.totalorder %s278_s6, %s278_s6 }
  0x1c   :  { %p285_p0 = por %p284_p13, %p283_p12 }
  0x1e   :  { %p286_p1 = pnand %p285_p0, %p279_p11 }
  0x20   :  { %289 = shalt.err (!%p286_p1)
}
  0x21   :  { %s320_s0 = smov 128   ;;  %s321_s7 = smov 8  }
  0x22   :  { %32 = dma.hbm_to_vmem [thread:$0]  %s393_s1, 2048, %s346_s15, [#allocation6], %s320_s0, %s320_s0, %s321_s7  }
  0x23   :  { %312 = dma.done.wait [#allocation3], 128  }
  0x24   :  { %313 = vsyncadd [#allocation3], 4294967168 }
  0x25   :  { %314 = dma.done.wait [#allocation6], 2048  }
  0x26   :  { %315 = vsyncadd [#allocation6], 4294965248  ;;  %v322_v0 = vmov 0.0|0.0   ;;  %vm323_vm0 = vmmov 0   ;;  %v324_v1 = vmov 0.0   ;;  %v42_v2 = vld [vmem:[#allocation5] sm:$0xff] }
  0x27   :  { %212 = vmatprep.subr.bf16.mxu0 %v322_v0  ;;  %209 = vmatprep.mubr.msk.f32.mxu0 %vm323_vm0, %v324_v1  ;;  %v43_v3 = vld [vmem:[#allocation5 + $0x8] sm:$0xff]  ;;  %v44_v5 = vld [vmem:[#allocation5 + $0x10] sm:$0xff]  ;;  %v45_v6 = vld [vmem:[#allocation5 + $0x18] sm:$0xff]  ;;  %s325_s11 = smov [#allocation7]  }
  0x28   :  { %v213_v4 = vpack.c.bf16 %v43_v3, %v42_v2  ;;  %v41_v7 = vld [vmem:[#allocation2] sm:$0xff]  ;;  %v216_v9 = vpack.c.bf16 %v45_v6, %v44_v5  ;;  %v46_v10 = vld [vmem:[#allocation5 + $0x20] sm:$0xff]  ;;  %v47_v11 = vld [vmem:[#allocation5 + $0x28] sm:$0xff]  ;;  %s149_s12 = sshll.u32 %s325_s11, 4  ;;  %s150_s12 = int_to_ptr.vmem [resolvable:$true] %s149_s12 }
  0x29   :  { %v59_v8 = vmul.f32 %v41_v7, %v41_v7  ;;  %v219_v12 = vpack.c.bf16 %v47_v11, %v46_v10  ;;  %v48_v13 = vld [vmem:[#allocation5 + $0x30] sm:$0xff]  ;;  %v49_v14 = vld [vmem:[#allocation5 + $0x38] sm:$0xff]  ;;  %v50_v16 = vld [vmem:[#allocation5 + $0x40] sm:$0xff]  ;;  %s290_s13 = scalar_lea.vmem %s150_s12, 128  ;;  %p295_p3 = scmp.lt.s32.totalorder %s150_s12, %s150_s12 }
  0x2a   :  { %214 = vmatpush3.bf16.xpose.msra.mxu0 %v213_v4  ;;  %v222_v15 = vpack.c.bf16 %v49_v14, %v48_v13  ;;  %v51_v17 = vld [vmem:[#allocation5 + $0x48] sm:$0xff]  ;;  %v52_v19 = vld [vmem:[#allocation5 + $0x50] sm:$0xff]  ;;  %v53_v20 = vld [vmem:[#allocation5 + $0x58] sm:$0xff]  ;;  %p291_p2 = scmp.ne.s32.totalorder %s150_s12, %s290_s13  ;;  %p296_p4 = scmp.lt.s32.totalorder %s290_s13, %s290_s13 }
  0x2b   :  { %215 = vmatprep.subr.bf16.mxu0 %v322_v0  ;;  %60 = vadd.xlane.f32.xlu0 %v59_v8  ;;  %v225_v18 = vpack.c.bf16 %v51_v17, %v50_v16  ;;  %v228_v21 = vpack.c.bf16 %v53_v20, %v52_v19  ;;  %v54_v22 = vld [vmem:[#allocation5 + $0x60] sm:$0xff]  ;;  %v55_v23 = vld [vmem:[#allocation5 + $0x68] sm:$0xff]  ;;  %v56_v25 = vld [vmem:[#allocation5 + $0x70] sm:$0xff] }
  0x2c   :  { %v231_v24 = vpack.c.bf16 %v55_v23, %v54_v22  ;;  %v57_v26 = vld [vmem:[#allocation5 + $0x78] sm:$0xff]  ;;  %p297_p5 = por %p296_p4, %p295_p3 }
  0x2d   :  { %v234_v27 = vpack.c.bf16 %v57_v26, %v56_v25  ;;  %v159_v31 = vld [vmem:[%s394_s2] ss:$0 sm:$0xff] }
  0x2e   :  { %p298_p6 = pnand %p297_p5, %p291_p2 }
  0x32   :  { %217 = vmatpush3.bf16.xpose.msra.mxu0 %v216_v9 }
  0x33   :  { %218 = vmatprep.subr.bf16.mxu0 %v322_v0 }
  0x3a   :  { %220 = vmatpush3.bf16.xpose.msra.mxu0 %v219_v12 }
  0x3b   :  { %221 = vmatprep.subr.bf16.mxu0 %v322_v0 }
  0x42   :  { %223 = vmatpush3.bf16.xpose.msra.mxu0 %v222_v15 }
  0x43   :  { %224 = vmatprep.subr.bf16.mxu0 %v322_v0 }
  0x4a   :  { %226 = vmatpush3.bf16.xpose.msra.mxu0 %v225_v18 }
  0x4b   :  { %227 = vmatprep.subr.bf16.mxu0 %v322_v0 }
  0x52   :  { %229 = vmatpush3.bf16.xpose.msra.mxu0 %v228_v21 }
  0x53   :  { %230 = vmatprep.subr.bf16.mxu0 %v322_v0 }
  0x5a   :  { %232 = vmatpush3.bf16.xpose.msra.mxu0 %v231_v24 }
  0x5b   :  { %233 = vmatprep.subr.bf16.mxu0 %v322_v0 }
  0x62   :  { %235 = vmatpush3.bf16.xpose.msra.mxu0 %v234_v27 }
  0x69   :  { %210 = vmatmul.mubr.f32.vlgmr.msra.gmra.mrb[0].mxu0 %v41_v7 }
  0xb8   :  { %v61_v28 = vpop.xlane.xlu0 %60 }
  0xb9   :  { %v62_v29 = vmax.f32 %v61_v28, 1e-24 }
  0xbb   :  { %244 = vrsqrt.f32 %v62_v29 }
  0xc5   :  { %v245_v30 = vpop.eup %244 }
 0x13c   :  { %v130_v32 = vpop.f32.mrb[0].mxu0 }
 0x13d   :  { %v134_v33 = vmul.f32 %v245_v30, %v130_v32  ;;  %v211_v34 = vpop.f32.mrb[1].mxu0 }
 0x13f   :  { %v141_v35 = vmul.f32 %v159_v31, %v134_v33 }
 0x141   :  { %142 = vst [vmem:[#allocation7] sm:$0xff] %v141_v35 }
 0x142   :  { %301 = shalt.err (!%p298_p6)
}
 0x143   :  { %s302_s16 = scalar_lea.hbm %s395_s3, 128 }
 0x144   :  { %p303_p7 = scmp.ne.s32.totalorder %s395_s3, %s302_s16  ;;  %p306_p8 = scmp.lt.u32.totalorder %s302_s16, %s395_s3 }
 0x146   :  { %p308_p9 = pnand %p306_p8, %p303_p7 }
 0x148   :  { %311 = shalt.err (!%p308_p9)
}
 0x149   :  { %152 = dma.vmem_to_hbm [thread:$0]  %s150_s12, 128, %s395_s3, [#allocation4]  }
 0x14a   :  { %316 = dma.done.wait [#allocation4], 128  }
 0x14b   :  { %317 = vsyncadd [#allocation4], 4294967168 }
 0x14c   :  { %156 = vsyncpa [#allocation3], 1 }
 0x14d   :  { %157 = vsyncpa [#allocation6], 1 }
 0x14e   :  { %158 = vsyncpa [#allocation4], 1 }

</bundles_post_ra>
